<compile_context>
chip_gen: v7x
topology: tpu7x:2x2x1
jax: 0.10.0
libtpu: 0.0.40
codegen_flags: <defaults>
</compile_context>

<pallas_src>
import functools

import jax
import jax.numpy as jnp
from jax.experimental import pallas as pl
from jax.experimental.pallas import tpu as pltpu


def _crop_patch_kernel(x_ref, o_ref, fpad_ref, *, size, padding, n_h, n_w):
    """x_ref: (1, C, H, W); o_ref: (n_h*n_w, C, win, win); fpad_ref: (C, H+2p, W+2p)."""
    _, _, H, W = x_ref.shape
    win = size + 2 * padding

    # F.pad(feature, (p, p, p, p)) fused into the kernel via a VMEM scratch.
    # Zero every grid step (scratch persists across steps; with a "parallel" axis the
    # first step is not guaranteed to run on every core, so do not init-once).
    fpad_ref[...] = jnp.zeros_like(fpad_ref)
    fpad_ref[:, padding:padding + H, padding:padding + W] = x_ref[0]

    # .unfold(1, win, size).unfold(2, win, size): overlapping windows, stride = size.
    # All offsets are static -> plain vector loads / stores, no relayout surprises.
    for i in range(n_h):
        for j in range(n_w):
            o_ref[i * n_w + j] = fpad_ref[:, i * size:i * size + win,
                                          j * size:j * size + win]


def generate_mask_all_patches(out_lr, *, size=4, padding=1):
    """out_lr: (B, C, H, W) -> (patches (B*nH*nW, C, size+2p, size+2p), idx tuple)."""
    B, C, H, W = out_lr.shape
    assert H % size == 0 and W % size == 0, "patch size must divide H and W"
    n_h, n_w = H // size, W // size
    win = size + 2 * padding
    P = B * n_h * n_w

    kernel = functools.partial(_crop_patch_kernel, size=size, padding=padding,
                               n_h=n_h, n_w=n_w)
    patches = pl.pallas_call(
        kernel,
        out_shape=jax.ShapeDtypeStruct((P, C, win, win), out_lr.dtype),
        grid=(B,),
        in_specs=[pl.BlockSpec((1, C, H, W), lambda b: (b, 0, 0, 0))],
        out_specs=pl.BlockSpec((n_h * n_w, C, win, win), lambda b: (b, 0, 0, 0)),
        scratch_shapes=[pltpu.VMEM((C, H + 2 * padding, W + 2 * padding), out_lr.dtype)],
        compiler_params=pltpu.CompilerParams(dimension_semantics=("parallel",)),
    )(out_lr)

    # torch.nonzero(ones(B, nH, nW)) == static lexicographic enumeration of all tiles.
    b_idx = jnp.repeat(jnp.arange(B, dtype=jnp.int32), n_h * n_w)
    i_idx = jnp.tile(jnp.repeat(jnp.arange(n_h, dtype=jnp.int32), n_w), B)
    j_idx = jnp.tile(jnp.arange(n_w, dtype=jnp.int32), B * n_h)
    return patches, (b_idx, i_idx, j_idx)


def _reference(out_lr, *, size=4, padding=1):
    """Pure-JAX reference of the torch forward (pad + unfold + gather of all tiles)."""
    B, C, H, W = out_lr.shape
    n_h, n_w = H // size, W // size
    win = size + 2 * padding
    xp = jnp.pad(out_lr, ((0, 0), (0, 0), (padding, padding), (padding, padding)))
    pats = []
    for b in range(B):
        for i in range(n_h):
            for j in range(n_w):
                pats.append(xp[b, :, i * size:i * size + win, j * size:j * size + win])
    return jnp.stack(pats, axis=0)


if __name__ == "__main__":
    key = jax.random.PRNGKey(0)
    B, C, H, W = 2, 4, 16, 16
    size, padding = 4, 1
    out_lr = jax.random.normal(key, (B, C, H, W), jnp.float32)

    fwd = jax.jit(functools.partial(generate_mask_all_patches, size=size, padding=padding))
    patches, idx = fwd(out_lr)
    patches = jax.block_until_ready(patches)

    n_h, n_w = H // size, W // size
    win = size + 2 * padding
    assert patches.shape == (B * n_h * n_w, C, win, win), patches.shape
    assert idx[0].shape == (B * n_h * n_w,)
    ref = _reference(out_lr, size=size, padding=padding)
    assert jnp.array_equal(patches, ref), float(jnp.max(jnp.abs(patches - ref)))
    assert bool(jnp.all(jnp.isfinite(patches)))
    print("KERNEL_OK")
</pallas_src>

<mosaic_0001>
module attributes {stable_mosaic.version = 11 : i64} {
  func.func @_crop_patch_kernel(%arg0: i32, %arg1: memref<1x4x16x16xf32, #tpu.memory_space<vmem>>, %arg2: memref<16x4x6x6xf32, #tpu.memory_space<vmem>>, %arg3: memref<4x18x18xf32, #tpu.memory_space<vmem>>) attributes {dimension_semantics = [#tpu.dimension_semantics<parallel>], iteration_bounds = array<i64: 2>, scalar_prefetch = 0 : i64, scratch_operands = 1 : i64, tpu.core_type = #tpu.core_type<tc>, window_params = [{transform_indices = @transform_0, window_bounds = array<i64: 1, 4, 16, 16>}, {transform_indices = @transform_1, window_bounds = array<i64: 16, 4, 6, 6>}]} {
    %cst = arith.constant 0.000000e+00 : f32
    %0 = vector.broadcast %cst : f32 to vector<4x18x18xf32>
    %c0 = arith.constant 0 : index
    %c0_0 = arith.constant 0 : index
    %c0_1 = arith.constant 0 : index
    %1 = vector.load %arg3[%c0, %c0_0, %c0_1] : memref<4x18x18xf32, #tpu.memory_space<vmem>>, vector<4x18x18xf32>
    tpu.vector_store %arg3[%c0, %c0_0, %c0_1], %0 {strides = array<i32>} : memref<4x18x18xf32, #tpu.memory_space<vmem>>, vector<4x18x18xf32>,
    %c0_2 = arith.constant 0 : index
    %c0_3 = arith.constant 0 : index
    %c0_4 = arith.constant 0 : index
    %c0_5 = arith.constant 0 : index
    %2 = vector.load %arg1[%c0_2, %c0_3, %c0_4, %c0_5] : memref<1x4x16x16xf32, #tpu.memory_space<vmem>>, vector<1x4x16x16xf32>
    %3 = vector.shape_cast %2 : vector<1x4x16x16xf32> to vector<4x16x16xf32>
    %c0_6 = arith.constant 0 : index
    %c1 = arith.constant 1 : index
    %c1_7 = arith.constant 1 : index
    %4 = vector.load %arg3[%c0_6, %c1, %c1_7] : memref<4x18x18xf32, #tpu.memory_space<vmem>>, vector<4x16x16xf32>
    tpu.vector_store %arg3[%c0_6, %c1, %c1_7], %3 {strides = array<i32>} : memref<4x18x18xf32, #tpu.memory_space<vmem>>, vector<4x16x16xf32>,
    %c0_8 = arith.constant 0 : index
    %c0_9 = arith.constant 0 : index
    %c0_10 = arith.constant 0 : index
    %5 = vector.load %arg3[%c0_8, %c0_9, %c0_10] : memref<4x18x18xf32, #tpu.memory_space<vmem>>, vector<4x6x6xf32>
    %c0_11 = arith.constant 0 : index
    %c0_12 = arith.constant 0 : index
    %c0_13 = arith.constant 0 : index
    %c0_14 = arith.constant 0 : index
    %6 = vector.load %arg2[%c0_11, %c0_12, %c0_13, %c0_14] : memref<16x4x6x6xf32, #tpu.memory_space<vmem>>, vector<1x4x6x6xf32>
    %7 = vector.shape_cast %6 : vector<1x4x6x6xf32> to vector<4x6x6xf32>
    %8 = vector.shape_cast %5 : vector<4x6x6xf32> to vector<1x4x6x6xf32>
    tpu.vector_store %arg2[%c0_11, %c0_12, %c0_13, %c0_14], %8 {strides = array<i32>} : memref<16x4x6x6xf32, #tpu.memory_space<vmem>>, vector<1x4x6x6xf32>,
    %c0_15 = arith.constant 0 : index
    %c0_16 = arith.constant 0 : index
    %c4 = arith.constant 4 : index
    %9 = vector.load %arg3[%c0_15, %c0_16, %c4] : memref<4x18x18xf32, #tpu.memory_space<vmem>>, vector<4x6x6xf32>
    %c1_17 = arith.constant 1 : index
    %c0_18 = arith.constant 0 : index
    %c0_19 = arith.constant 0 : index
    %c0_20 = arith.constant 0 : index
    %10 = vector.load %arg2[%c1_17, %c0_18, %c0_19, %c0_20] : memref<16x4x6x6xf32, #tpu.memory_space<vmem>>, vector<1x4x6x6xf32>
    %11 = vector.shape_cast %10 : vector<1x4x6x6xf32> to vector<4x6x6xf32>
    %12 = vector.shape_cast %9 : vector<4x6x6xf32> to vector<1x4x6x6xf32>
    tpu.vector_store %arg2[%c1_17, %c0_18, %c0_19, %c0_20], %12 {strides = array<i32>} : memref<16x4x6x6xf32, #tpu.memory_space<vmem>>, vector<1x4x6x6xf32>,
    %c0_21 = arith.constant 0 : index
    %c0_22 = arith.constant 0 : index
    %c8 = arith.constant 8 : index
    %13 = vector.load %arg3[%c0_21, %c0_22, %c8] : memref<4x18x18xf32, #tpu.memory_space<vmem>>, vector<4x6x6xf32>
    %c2 = arith.constant 2 : index
    %c0_23 = arith.constant 0 : index
    %c0_24 = arith.constant 0 : index
    %c0_25 = arith.constant 0 : index
    %14 = vector.load %arg2[%c2, %c0_23, %c0_24, %c0_25] : memref<16x4x6x6xf32, #tpu.memory_space<vmem>>, vector<1x4x6x6xf32>
    %15 = vector.shape_cast %14 : vector<1x4x6x6xf32> to vector<4x6x6xf32>
    %16 = vector.shape_cast %13 : vector<4x6x6xf32> to vector<1x4x6x6xf32>
    tpu.vector_store %arg2[%c2, %c0_23, %c0_24, %c0_25], %16 {strides = array<i32>} : memref<16x4x6x6xf32, #tpu.memory_space<vmem>>, vector<1x4x6x6xf32>,
    %c0_26 = arith.constant 0 : index
    %c0_27 = arith.constant 0 : index
    %c12 = arith.constant 12 : index
    %17 = vector.load %arg3[%c0_26, %c0_27, %c12] : memref<4x18x18xf32, #tpu.memory_space<vmem>>, vector<4x6x6xf32>
    %c3 = arith.constant 3 : index
    %c0_28 = arith.constant 0 : index
    %c0_29 = arith.constant 0 : index
    %c0_30 = arith.constant 0 : index
    %18 = vector.load %arg2[%c3, %c0_28, %c0_29, %c0_30] : memref<16x4x6x6xf32, #tpu.memory_space<vmem>>, vector<1x4x6x6xf32>
    %19 = vector.shape_cast %18 : vector<1x4x6x6xf32> to vector<4x6x6xf32>
    %20 = vector.shape_cast %17 : vector<4x6x6xf32> to vector<1x4x6x6xf32>
    tpu.vector_store %arg2[%c3, %c0_28, %c0_29, %c0_30], %20 {strides = array<i32>} : memref<16x4x6x6xf32, #tpu.memory_space<vmem>>, vector<1x4x6x6xf32>,
    %c0_31 = arith.constant 0 : index
    %c4_32 = arith.constant 4 : index
    %c0_33 = arith.constant 0 : index
    %21 = vector.load %arg3[%c0_31, %c4_32, %c0_33] : memref<4x18x18xf32, #tpu.memory_space<vmem>>, vector<4x6x6xf32>
    %c4_34 = arith.constant 4 : index
    %c0_35 = arith.constant 0 : index
    %c0_36 = arith.constant 0 : index
    %c0_37 = arith.constant 0 : index
    %22 = vector.load %arg2[%c4_34, %c0_35, %c0_36, %c0_37] : memref<16x4x6x6xf32, #tpu.memory_space<vmem>>, vector<1x4x6x6xf32>
    %23 = vector.shape_cast %22 : vector<1x4x6x6xf32> to vector<4x6x6xf32>
    %24 = vector.shape_cast %21 : vector<4x6x6xf32> to vector<1x4x6x6xf32>
    tpu.vector_store %arg2[%c4_34, %c0_35, %c0_36, %c0_37], %24 {strides = array<i32>} : memref<16x4x6x6xf32, #tpu.memory_space<vmem>>, vector<1x4x6x6xf32>,
    %c0_38 = arith.constant 0 : index
    %c4_39 = arith.constant 4 : index
    %c4_40 = arith.constant 4 : index
    %25 = vector.load %arg3[%c0_38, %c4_39, %c4_40] : memref<4x18x18xf32, #tpu.memory_space<vmem>>, vector<4x6x6xf32>
    %c5 = arith.constant 5 : index
    %c0_41 = arith.constant 0 : index
    %c0_42 = arith.constant 0 : index
    %c0_43 = arith.constant 0 : index
    %26 = vector.load %arg2[%c5, %c0_41, %c0_42, %c0_43] : memref<16x4x6x6xf32, #tpu.memory_space<vmem>>, vector<1x4x6x6xf32>
    %27 = vector.shape_cast %26 : vector<1x4x6x6xf32> to vector<4x6x6xf32>
    %28 = vector.shape_cast %25 : vector<4x6x6xf32> to vector<1x4x6x6xf32>
    tpu.vector_store %arg2[%c5, %c0_41, %c0_42, %c0_43], %28 {strides = array<i32>} : memref<16x4x6x6xf32, #tpu.memory_space<vmem>>, vector<1x4x6x6xf32>,
    %c0_44 = arith.constant 0 : index
    %c4_45 = arith.constant 4 : index
    %c8_46 = arith.constant 8 : index
    %29 = vector.load %arg3[%c0_44, %c4_45, %c8_46] : memref<4x18x18xf32, #tpu.memory_space<vmem>>, vector<4x6x6xf32>
    %c6 = arith.constant 6 : index
    %c0_47 = arith.constant 0 : index
    %c0_48 = arith.constant 0 : index
    %c0_49 = arith.constant 0 : index
    %30 = vector.load %arg2[%c6, %c0_47, %c0_48, %c0_49] : memref<16x4x6x6xf32, #tpu.memory_space<vmem>>, vector<1x4x6x6xf32>
    %31 = vector.shape_cast %30 : vector<1x4x6x6xf32> to vector<4x6x6xf32>
    %32 = vector.shape_cast %29 : vector<4x6x6xf32> to vector<1x4x6x6xf32>
    tpu.vector_store %arg2[%c6, %c0_47, %c0_48, %c0_49], %32 {strides = array<i32>} : memref<16x4x6x6xf32, #tpu.memory_space<vmem>>, vector<1x4x6x6xf32>,
    %c0_50 = arith.constant 0 : index
    %c4_51 = arith.constant 4 : index
    %c12_52 = arith.constant 12 : index
    %33 = vector.load %arg3[%c0_50, %c4_51, %c12_52] : memref<4x18x18xf32, #tpu.memory_space<vmem>>, vector<4x6x6xf32>
    %c7 = arith.constant 7 : index
    %c0_53 = arith.constant 0 : index
    %c0_54 = arith.constant 0 : index
    %c0_55 = arith.constant 0 : index
    %34 = vector.load %arg2[%c7, %c0_53, %c0_54, %c0_55] : memref<16x4x6x6xf32, #tpu.memory_space<vmem>>, vector<1x4x6x6xf32>
    %35 = vector.shape_cast %34 : vector<1x4x6x6xf32> to vector<4x6x6xf32>
    %36 = vector.shape_cast %33 : vector<4x6x6xf32> to vector<1x4x6x6xf32>
    tpu.vector_store %arg2[%c7, %c0_53, %c0_54, %c0_55], %36 {strides = array<i32>} : memref<16x4x6x6xf32, #tpu.memory_space<vmem>>, vector<1x4x6x6xf32>,
    %c0_56 = arith.constant 0 : index
    %c8_57 = arith.constant 8 : index
    %c0_58 = arith.constant 0 : index
    %37 = vector.load %arg3[%c0_56, %c8_57, %c0_58] : memref<4x18x18xf32, #tpu.memory_space<vmem>>, vector<4x6x6xf32>
    %c8_59 = arith.constant 8 : index
    %c0_60 = arith.constant 0 : index
    %c0_61 = arith.constant 0 : index
    %c0_62 = arith.constant 0 : index
    %38 = vector.load %arg2[%c8_59, %c0_60, %c0_61, %c0_62] : memref<16x4x6x6xf32, #tpu.memory_space<vmem>>, vector<1x4x6x6xf32>
    %39 = vector.shape_cast %38 : vector<1x4x6x6xf32> to vector<4x6x6xf32>
    %40 = vector.shape_cast %37 : vector<4x6x6xf32> to vector<1x4x6x6xf32>
    tpu.vector_store %arg2[%c8_59, %c0_60, %c0_61, %c0_62], %40 {strides = array<i32>} : memref<16x4x6x6xf32, #tpu.memory_space<vmem>>, vector<1x4x6x6xf32>,
    %c0_63 = arith.constant 0 : index
    %c8_64 = arith.constant 8 : index
    %c4_65 = arith.constant 4 : index
    %41 = vector.load %arg3[%c0_63, %c8_64, %c4_65] : memref<4x18x18xf32, #tpu.memory_space<vmem>>, vector<4x6x6xf32>
    %c9 = arith.constant 9 : index
    %c0_66 = arith.constant 0 : index
    %c0_67 = arith.constant 0 : index
    %c0_68 = arith.constant 0 : index
    %42 = vector.load %arg2[%c9, %c0_66, %c0_67, %c0_68] : memref<16x4x6x6xf32, #tpu.memory_space<vmem>>, vector<1x4x6x6xf32>
    %43 = vector.shape_cast %42 : vector<1x4x6x6xf32> to vector<4x6x6xf32>
    %44 = vector.shape_cast %41 : vector<4x6x6xf32> to vector<1x4x6x6xf32>
    tpu.vector_store %arg2[%c9, %c0_66, %c0_67, %c0_68], %44 {strides = array<i32>} : memref<16x4x6x6xf32, #tpu.memory_space<vmem>>, vector<1x4x6x6xf32>,
    %c0_69 = arith.constant 0 : index
    %c8_70 = arith.constant 8 : index
    %c8_71 = arith.constant 8 : index
    %45 = vector.load %arg3[%c0_69, %c8_70, %c8_71] : memref<4x18x18xf32, #tpu.memory_space<vmem>>, vector<4x6x6xf32>
    %c10 = arith.constant 10 : index
    %c0_72 = arith.constant 0 : index
    %c0_73 = arith.constant 0 : index
    %c0_74 = arith.constant 0 : index
    %46 = vector.load %arg2[%c10, %c0_72, %c0_73, %c0_74] : memref<16x4x6x6xf32, #tpu.memory_space<vmem>>, vector<1x4x6x6xf32>
    %47 = vector.shape_cast %46 : vector<1x4x6x6xf32> to vector<4x6x6xf32>
    %48 = vector.shape_cast %45 : vector<4x6x6xf32> to vector<1x4x6x6xf32>
    tpu.vector_store %arg2[%c10, %c0_72, %c0_73, %c0_74], %48 {strides = array<i32>} : memref<16x4x6x6xf32, #tpu.memory_space<vmem>>, vector<1x4x6x6xf32>,
    %c0_75 = arith.constant 0 : index
    %c8_76 = arith.constant 8 : index
    %c12_77 = arith.constant 12 : index
    %49 = vector.load %arg3[%c0_75, %c8_76, %c12_77] : memref<4x18x18xf32, #tpu.memory_space<vmem>>, vector<4x6x6xf32>
    %c11 = arith.constant 11 : index
    %c0_78 = arith.constant 0 : index
    %c0_79 = arith.constant 0 : index
    %c0_80 = arith.constant 0 : index
    %50 = vector.load %arg2[%c11, %c0_78, %c0_79, %c0_80] : memref<16x4x6x6xf32, #tpu.memory_space<vmem>>, vector<1x4x6x6xf32>
    %51 = vector.shape_cast %50 : vector<1x4x6x6xf32> to vector<4x6x6xf32>
    %52 = vector.shape_cast %49 : vector<4x6x6xf32> to vector<1x4x6x6xf32>
    tpu.vector_store %arg2[%c11, %c0_78, %c0_79, %c0_80], %52 {strides = array<i32>} : memref<16x4x6x6xf32, #tpu.memory_space<vmem>>, vector<1x4x6x6xf32>,
    %c0_81 = arith.constant 0 : index
    %c12_82 = arith.constant 12 : index
    %c0_83 = arith.constant 0 : index
    %53 = vector.load %arg3[%c0_81, %c12_82, %c0_83] : memref<4x18x18xf32, #tpu.memory_space<vmem>>, vector<4x6x6xf32>
    %c12_84 = arith.constant 12 : index
    %c0_85 = arith.constant 0 : index
    %c0_86 = arith.constant 0 : index
    %c0_87 = arith.constant 0 : index
    %54 = vector.load %arg2[%c12_84, %c0_85, %c0_86, %c0_87] : memref<16x4x6x6xf32, #tpu.memory_space<vmem>>, vector<1x4x6x6xf32>
    %55 = vector.shape_cast %54 : vector<1x4x6x6xf32> to vector<4x6x6xf32>
    %56 = vector.shape_cast %53 : vector<4x6x6xf32> to vector<1x4x6x6xf32>
    tpu.vector_store %arg2[%c12_84, %c0_85, %c0_86, %c0_87], %56 {strides = array<i32>} : memref<16x4x6x6xf32, #tpu.memory_space<vmem>>, vector<1x4x6x6xf32>,
    %c0_88 = arith.constant 0 : index
    %c12_89 = arith.constant 12 : index
    %c4_90 = arith.constant 4 : index
    %57 = vector.load %arg3[%c0_88, %c12_89, %c4_90] : memref<4x18x18xf32, #tpu.memory_space<vmem>>, vector<4x6x6xf32>
    %c13 = arith.constant 13 : index
    %c0_91 = arith.constant 0 : index
    %c0_92 = arith.constant 0 : index
    %c0_93 = arith.constant 0 : index
    %58 = vector.load %arg2[%c13, %c0_91, %c0_92, %c0_93] : memref<16x4x6x6xf32, #tpu.memory_space<vmem>>, vector<1x4x6x6xf32>
    %59 = vector.shape_cast %58 : vector<1x4x6x6xf32> to vector<4x6x6xf32>
    %60 = vector.shape_cast %57 : vector<4x6x6xf32> to vector<1x4x6x6xf32>
    tpu.vector_store %arg2[%c13, %c0_91, %c0_92, %c0_93], %60 {strides = array<i32>} : memref<16x4x6x6xf32, #tpu.memory_space<vmem>>, vector<1x4x6x6xf32>,
    %c0_94 = arith.constant 0 : index
    %c12_95 = arith.constant 12 : index
    %c8_96 = arith.constant 8 : index
    %61 = vector.load %arg3[%c0_94, %c12_95, %c8_96] : memref<4x18x18xf32, #tpu.memory_space<vmem>>, vector<4x6x6xf32>
    %c14 = arith.constant 14 : index
    %c0_97 = arith.constant 0 : index
    %c0_98 = arith.constant 0 : index
    %c0_99 = arith.constant 0 : index
    %62 = vector.load %arg2[%c14, %c0_97, %c0_98, %c0_99] : memref<16x4x6x6xf32, #tpu.memory_space<vmem>>, vector<1x4x6x6xf32>
    %63 = vector.shape_cast %62 : vector<1x4x6x6xf32> to vector<4x6x6xf32>
    %64 = vector.shape_cast %61 : vector<4x6x6xf32> to vector<1x4x6x6xf32>
    tpu.vector_store %arg2[%c14, %c0_97, %c0_98, %c0_99], %64 {strides = array<i32>} : memref<16x4x6x6xf32, #tpu.memory_space<vmem>>, vector<1x4x6x6xf32>,
    %c0_100 = arith.constant 0 : index
    %c12_101 = arith.constant 12 : index
    %c12_102 = arith.constant 12 : index
    %65 = vector.load %arg3[%c0_100, %c12_101, %c12_102] : memref<4x18x18xf32, #tpu.memory_space<vmem>>, vector<4x6x6xf32>
    %c15 = arith.constant 15 : index
    %c0_103 = arith.constant 0 : index
    %c0_104 = arith.constant 0 : index
    %c0_105 = arith.constant 0 : index
    %66 = vector.load %arg2[%c15, %c0_103, %c0_104, %c0_105] : memref<16x4x6x6xf32, #tpu.memory_space<vmem>>, vector<1x4x6x6xf32>
    %67 = vector.shape_cast %66 : vector<1x4x6x6xf32> to vector<4x6x6xf32>
    %68 = vector.shape_cast %65 : vector<4x6x6xf32> to vector<1x4x6x6xf32>
    tpu.vector_store %arg2[%c15, %c0_103, %c0_104, %c0_105], %68 {strides = array<i32>} : memref<16x4x6x6xf32, #tpu.memory_space<vmem>>, vector<1x4x6x6xf32>,
    return
  }
  func.func @transform_0(%arg0: i32) -> (i32, i32, i32, i32) {
    %c0_i32 = arith.constant 0 : i32
    %c0_i32_0 = arith.constant 0 : i32
    %c0_i32_1 = arith.constant 0 : i32
    %c0_i32_2 = arith.constant 0 : i32
    return %arg0, %c0_i32, %c0_i32_0, %c0_i32_1 : i32, i32, i32, i32
  }
  func.func @transform_1(%arg0: i32) -> (i32, i32, i32, i32) {
    %c0_i32 = arith.constant 0 : i32
    %c0_i32_0 = arith.constant 0 : i32
    %c0_i32_1 = arith.constant 0 : i32
    %c0_i32_2 = arith.constant 0 : i32
    return %arg0, %c0_i32, %c0_i32_0, %c0_i32_1 : i32, i32, i32, i32
  }
}

</mosaic_0001>

<bundles_post_ra>
// kernel: tile.17
= control target key start
LH: loop header
LB: loop body
LE: loop exit
PB: predicated region body
PF: predicated region fallthrough
CT: control target
= control target key end

     0   :  { %s103_s10 = smov 28   ;;  %s104_s11 = smov 20   ;;  %vm4_vm0 = vcmask 31744   ;;  %s157_s0 = inlined_call_operand.vmem [shape: s32[8,4], index: 0, kind: input, shape index: {}]   ;;  %s158_s1 = inlined_call_operand.hbm [shape: s32[32], index: 1, kind: output, shape index: {}]  }
   0x1   :  { %v64_v0 = vld [vmem:[%s157_s0 + $0x7] sm:$0x1]   ;;  %v66_v1 = vld [vmem:[%s157_s0 + $0x5] sm:$0x1]   ;;  %v65_v2 = vld [vmem:[%s157_s0 + $0x6] sm:$0x1]  }
   0x2   :  { %8 = vrot.lane.b32.xlu0 %v64_v0, %s103_s10  ;;  %20 = vrot.lane.b32.xlu1 %v66_v1, %s104_s11  ;;  %v67_v3 = vld [vmem:[%s157_s0 + $0x4] sm:$0x1]   ;;  %v3_v4 = vld [vmem:[%s157_s0] sm:$0x1]  }
   0x3   :  { %2 = vsyncpa [#allocation1], 0  ;;  %s105_s18 = smov 24   ;;  %s106_s19 = smov 16   ;;  %5 = vst.msk [vmem:[#allocation2] sm:$0x1] %vm4_vm0, %v3_v4  }
   0x4   :  { %v68_v5 = vld [vmem:[%s157_s0 + $0x3] sm:$0x1]   ;;  %v69_v6 = vld [vmem:[%s157_s0 + $0x2] sm:$0x1]   ;;  %s107_s24 = smov 12   ;;  %s108_s25 = smov 8  }
   0x5   :  { %v70_v7 = vld [vmem:[%s157_s0 + $0x1] sm:$0x1]   ;;  %s109_s0 = smov 4   ;;  %vm10_vm1 = vcmask 261344   ;;  %vm16_vm2 = vcmask 228544   ;;  %vm22_vm3 = vcmask 195744  }
   0x6   :  { %14 = vrot.lane.b32.xlu0 %v65_v2, %s105_s18  ;;  %26 = vrot.lane.b32.xlu1 %v67_v3, %s106_s19  ;;  %vm28_vm4 = vcmask 162944   ;;  %vm34_vm5 = vcmask 130144   ;;  %vm40_vm6 = vcmask 97344   ;;  %vm46_vm7 = vcmask 64544   ;;  %s110_s28 = smov [#allocation0]  }
   0x7   :  { %s58_s29 = sshll.u32 %s110_s28, 4  ;;  %s59_s29 = int_to_ptr.vmem [resolvable:$true] %s58_s29 }
   0x8   :  { %s79_s30 = scalar_lea.vmem %s59_s29, 16  ;;  %s83_s2 = scalar_lea.vmem %s59_s29, 32 }
   0x9   :  { %p80_p0 = scmp.ne.s32.totalorder %s59_s29, %s79_s30  ;;  %p84_p1 = scmp.lt.s32.totalorder %s59_s29, %s59_s29 }
   0xa   :  { %32 = vrot.lane.b32.xlu0 %v68_v5, %s107_s24  ;;  %38 = vrot.lane.b32.xlu1 %v69_v6, %s108_s25  ;;  %p85_p2 = scmp.lt.s32.totalorder %s83_s2, %s79_s30 }
   0xc   :  { %p86_p3 = por %p85_p2, %p84_p1 }
   0xe   :  { %44 = vrot.lane.b32.xlu0 %v70_v7, %s109_s0  ;;  %p87_p4 = pnand %p86_p3, %p80_p0 }
  0x74   :  { %v9_v8 = vpop.permute.xlu0 %8   ;;  %v21_v9 = vpop.permute.xlu1 %20  }
  0x75   :  { %11 = vst.msk [vmem:[#allocation2] sm:$0x1] %vm10_vm1, %v9_v8  }
  0x78   :  { %v15_v10 = vpop.permute.xlu0 %14   ;;  %v27_v11 = vpop.permute.xlu1 %26  }
  0x79   :  { %17 = vst.msk [vmem:[#allocation2] sm:$0x1] %vm16_vm2, %v15_v10  }
  0x7a   :  { %23 = vst.msk [vmem:[#allocation2] sm:$0x1] %vm22_vm3, %v21_v9  }
  0x7b   :  { %29 = vst.msk [vmem:[#allocation2] sm:$0x1] %vm28_vm4, %v27_v11  }
  0x7c   :  { %v33_v12 = vpop.permute.xlu0 %32   ;;  %v39_v13 = vpop.permute.xlu1 %38  }
  0x7d   :  { %35 = vst.msk [vmem:[#allocation2] sm:$0x1] %vm34_vm5, %v33_v12  }
  0x7e   :  { %41 = vst.msk [vmem:[#allocation2] sm:$0x1] %vm40_vm6, %v39_v13  }
  0x80   :  { %v45_v14 = vpop.permute.xlu0 %44  }
  0x81   :  { %47 = vst.msk [vmem:[#allocation2] sm:$0x1] %vm46_vm7, %v45_v14  }
  0x88   :  { %v51_v15 = vld [vmem:[#allocation2] sm:$0x1] }
  0x89   :  { %53 = vst [vmem:[#allocation0] sm:$0x1] %v51_v15 }
  0x8a   :  { %90 = shalt.err (!%p87_p4)
}
  0x8b   :  { %s91_s5 = scalar_lea.hbm %s158_s1, 16 }
  0x8c   :  { %p92_p5 = scmp.ne.s32.totalorder %s158_s1, %s91_s5  ;;  %p95_p6 = scmp.lt.u32.totalorder %s91_s5, %s158_s1 }
  0x8e   :  { %p97_p7 = pnand %p95_p6, %p92_p5 }
  0x90   :  { %100 = shalt.err (!%p97_p7)
}
  0x91   :  { %61 = dma.vmem_to_hbm [thread:$0]  %s59_s29, 16, %s158_s1, [#allocation1]  }
  0x92   :  { %101 = dma.done.wait [#allocation1], 16  }
  0x93   :  { %102 = vsyncadd [#allocation1], 4294967280 }
  0x94   :  { %63 = vsyncpa [#allocation1], 1 }

// kernel: tile.10
= control target key start
LH: loop header
LB: loop body
LE: loop exit
PB: predicated region body
PF: predicated region fallthrough
CT: control target
= control target key end

     0   :  { %vm7_vm0 = vcmask 31744   ;;  %s37_s8 = smov 4   ;;  %s38_s9 = smov 8   ;;  %vm13_vm1 = vcmask 130144   ;;  %vm19_vm2 = vcmask 97344   ;;  %vm25_vm3 = vcmask 64544   ;;  %s55_s0 = inlined_call_operand.vmem [shape: s32[4,4], index: 0, kind: input, shape index: {}]   ;;  %s56_s1 = inlined_call_operand.vmem [shape: s32[16], index: 1, kind: output, shape index: {}]  }
   0x1   :  { %v4_v0 = vld [vmem:[%s55_s0] sm:$0xf]  ;;  %s36_s0 = smov 12  }
   0x2   :  { %5 = vst [vmem:[#allocation1] sm:$0xf] %v4_v0 }
   0x9   :  { %v10_v1 = vld [vmem:[#allocation1 + $0x3] sm:$0x1]   ;;  %v22_v2 = vld [vmem:[#allocation1 + $0x1] sm:$0x1]   ;;  %v6_v3 = vld [vmem:[#allocation1] sm:$0x1]  }
   0xa   :  { %11 = vrot.lane.b32.xlu0 %v10_v1, %s36_s0  ;;  %23 = vrot.lane.b32.xlu1 %v22_v2, %s37_s8  ;;  %v16_v4 = vld [vmem:[#allocation1 + $0x2] sm:$0x1]   ;;  %8 = vst.msk [vmem:[#allocation0] sm:$0x1] %vm7_vm0, %v6_v3  }
   0xe   :  { %17 = vrot.lane.b32.xlu0 %v16_v4, %s38_s9 }
  0x7c   :  { %v12_v5 = vpop.permute.xlu0 %11   ;;  %v24_v6 = vpop.permute.xlu1 %23  }
  0x7d   :  { %14 = vst.msk [vmem:[#allocation0] sm:$0x1] %vm13_vm1, %v12_v5  }
  0x80   :  { %v18_v7 = vpop.permute.xlu0 %17  }
  0x81   :  { %20 = vst.msk [vmem:[#allocation0] sm:$0x1] %vm19_vm2, %v18_v7  }
  0x82   :  { %26 = vst.msk [vmem:[#allocation0] sm:$0x1] %vm25_vm3, %v24_v6  }
  0x89   :  { %v30_v8 = vld [vmem:[#allocation0] sm:$0x1] }
  0x8a   :  { %32 = vst [vmem:[%s56_s1] sm:$0x1] %v30_v8 }

// kernel: tile.11
= control target key start
LH: loop header
LB: loop body
LE: loop exit
PB: predicated region body
PF: predicated region fallthrough
CT: control target
= control target key end

     0   :  { %s22_s0 = inlined_call_operand.vmem [shape: s32[16], index: 0, kind: input, shape index: {}]   ;;  %s23_s1 = inlined_call_operand.vmem [shape: s32[2,16], index: 1, kind: output, shape index: {}]  }
   0x1   :  { %v4_v0 = vld [vmem:[%s22_s0] ss:$0 sm:$0xff] }
   0x2   :  { %5 = vst [vmem:[%s23_s1] sm:$0x3] %v4_v0 }

// kernel: tile.12
= control target key start
LH: loop header
LB: loop body
LE: loop exit
PB: predicated region body
PF: predicated region fallthrough
CT: control target
= control target key end

     0   :  { %s85_s0 = inlined_call_operand.vmem [shape: s32[2,16], index: 0, kind: input, shape index: {}]   ;;  %s86_s1 = inlined_call_operand.hbm [shape: s32[32], index: 1, kind: output, shape index: {}]  }
   0x1   :  { %v5_v0 = vld [vmem:[%s85_s0] sm:$0x3] }
   0x2   :  { %6 = vst [vmem:[#allocation3] sm:$0x3] %v5_v0 }
   0x3   :  { %2 = vsyncpa [#allocation1], 0  ;;  %vm8_vm0 = vcmask 130048   ;;  %s58_s0 = smov 16   ;;  %vm14_vm1 = vcmask 261248   ;;  %s59_s8 = smov [#allocation0]  }
   0x4   :  { %s26_s9 = sshll.u32 %s59_s8, 4  ;;  %s27_s9 = int_to_ptr.vmem [resolvable:$true] %s26_s9 }
   0x5   :  { %s34_s10 = scalar_lea.vmem %s27_s9, 16  ;;  %s38_s11 = scalar_lea.vmem %s27_s9, 32 }
   0x6   :  { %p35_p0 = scmp.ne.s32.totalorder %s27_s9, %s34_s10  ;;  %p39_p1 = scmp.lt.s32.totalorder %s27_s9, %s27_s9 }
   0x7   :  { %p40_p2 = scmp.lt.s32.totalorder %s38_s11, %s34_s10 }
   0x9   :  { %v11_v1 = vld [vmem:[#allocation3 + $0x1] sm:$0x1]   ;;  %v7_v2 = vld [vmem:[#allocation3] sm:$0x1]   ;;  %p41_p3 = por %p40_p2, %p39_p1 }
   0xa   :  { %12 = vrot.lane.b32.xlu0 %v11_v1, %s58_s0  ;;  %9 = vst.msk [vmem:[#allocation2] sm:$0x1] %vm8_vm0, %v7_v2  }
   0xb   :  { %p42_p4 = pnand %p41_p3, %p35_p0 }
  0x7c   :  { %v13_v3 = vpop.permute.xlu0 %12  }
  0x7d   :  { %15 = vst.msk [vmem:[#allocation2] sm:$0x1] %vm14_vm1, %v13_v3  }
  0x84   :  { %v19_v4 = vld [vmem:[#allocation2] sm:$0x1] }
  0x85   :  { %21 = vst [vmem:[#allocation0] sm:$0x1] %v19_v4 }
  0x86   :  { %45 = shalt.err (!%p42_p4)
}
  0x87   :  { %s46_s14 = scalar_lea.hbm %s86_s1, 16 }
  0x88   :  { %p47_p5 = scmp.ne.s32.totalorder %s86_s1, %s46_s14  ;;  %p50_p6 = scmp.lt.u32.totalorder %s46_s14, %s86_s1 }
  0x8a   :  { %p52_p7 = pnand %p50_p6, %p47_p5 }
  0x8c   :  { %55 = shalt.err (!%p52_p7)
}
  0x8d   :  { %29 = dma.vmem_to_hbm [thread:$0]  %s27_s9, 16, %s86_s1, [#allocation1]  }
  0x8e   :  { %56 = dma.done.wait [#allocation1], 16  }
  0x8f   :  { %57 = vsyncadd [#allocation1], 4294967280 }
  0x90   :  { %31 = vsyncpa [#allocation1], 1 }

// kernel: generate_mask_all_patches.1
= control target key start
LH: loop header
LB: loop body
LE: loop exit
PB: predicated region body
PF: predicated region fallthrough
CT: control target
= control target key end

     0   :  { %6 = vsyncpa [#allocation4], 0  ;;  %s1117_s0 = inlined_call_operand.hbm [shape: f32[2,4,16,16], index: 0, kind: input, shape index: {}]   ;;  %s1118_s1 = inlined_call_operand.vmem [shape: f32[32,4,6,6], index: 1, kind: output, shape index: {}]  }
   0x1   :  { %8 = vsyncpa [#allocation4 + $0x1], 0  ;;  %s814_s6 = smov 0   ;;  %s816_s7 = smov 0  }
   0x2   :  { %s818_s8 = smov 0   ;;  %s820_s9 = smov 0  }
   0x3 LB: > { %s608_s10 = sadd.s32 4294967295, %s794_s9   ;;  %s834_s11 = sadd.s32 1, %s794_s9   ;;  %s794_s9 = sphi %s820_s9, %s1125_s9   ;;  %s790_s8 = sphi %s818_s8, %s1124_s8   ;;  %s786_s7 = sphi %s816_s7, %s1123_s7   ;;  %s782_s6 = sphi %s814_s6, %s1122_s6  }
   0x4   : > { %s18_s12 = ssub.s32 %s794_s9, %s834_s11  ;;  %s21_s13 = sadd.s32 1, %s790_s8 }
   0x5   : > { %p19_p0 = scmp.eq.s32.totalorder %s18_s12, 0  ;;  %p28_p1 = scmp.ne.s32.totalorder %s790_s8, %s786_s7 }
   0x6   : > { %p29_p2 = scmp.eq.s32.totalorder %s794_s9, 0  ;;  %p34_p3 = scmp.ne.s32.totalorder %s786_s7, %s782_s6 }
   0x7   : > { %s844_s14 = scalar_select %p19_p0, %s790_s8, %s21_s13  }
   0x8   : > { %p30_p4 = por %p29_p2, %p28_p1  ;;  %p35_p5 = scmp.eq.s32.totalorder %s608_s10, 0 }
   0x9   : > { %p690_p6 = scmp.lt.s32.totalorder %s794_s9, 2  ;;  %s84_s16 = sand.u32 1, %s790_s8  }
   0xa   : > { %p849_p7 = por %p35_p5, %p34_p3  ;;  %s612_s17 = sshll.u32 %s84_s16, 6 }
   0xb   : > { %s682_s18 = sshll.u32 %s794_s9, 10  ;;  %s88_s22 = scalar_lea.vmem [#allocation3], %s612_s17 }
   0xc   : > { %s858_s21 = scalar_lea.hbm %s1117_s0, %s682_s18  ;;  %s95_s23 = sshll.u32 %s88_s22, 4  ;;  %s860_s23 = int_to_ptr.vmem [resolvable:$true] %s95_s23 }
   0xd   : > { %p862_p8 = pnand %p690_p6, %p30_p4  ;;  %s867_s25 = scalar_lea.sflag [#allocation4], %s84_s16 }
   0xe   : > { %s730_s26 = scalar_lea.hbm %s858_s21, 1024  ;;  %s735_s29 = scalar_lea.hbm %s1117_s0, 2048 }
   0xf   : > { %p731_p10 = scmp.ne.s32.totalorder %s858_s21, %s730_s26  ;;  %p732_p11 = pneg %p862_p8 }
  0x10   : > { %p736_p0 = scmp.lt.u32.totalorder %s858_s21, %s1117_s0  ;;  %p737_p1 = scmp.lt.u32.totalorder %s735_s29, %s730_s26 }
  0x11   : > { %p733_p12 = pnand %p732_p11, %p731_p10  ;;  %p739_p3 = scmp.lt.u32.totalorder %s730_s26, %s858_s21 }
  0x12   : > { %p738_p2 = por %p737_p1, %p736_p0 }
  0x13   : > { %p734_p13 = pneg %p733_p12 }
  0x14   : > { %p740_p4 = por %p739_p3, %p738_p2 }
  0x16   : > { %p741_p5 = pnand %p740_p4, %p734_p13 }
  0x18   : > { %744 = shalt.err (!%p741_p5)
}
  0x19   : > { %s745_s3 = scalar_lea.vmem %s860_s23, 1024  ;;  %s796_s4 = smov [#allocation3]  }
  0x1a   : > { %p746_p6 = scmp.ne.s32.totalorder %s860_s23, %s745_s3  ;;  %s750_s5 = sshll.u32 %s796_s4, 4  ;;  %s751_s5 = int_to_ptr.vmem [resolvable:$false] %s750_s5 }
  0x1b   : > { %s752_s6 = scalar_lea.vmem %s751_s5, 2048  ;;  %p753_p9 = scmp.lt.s32.totalorder %s860_s23, %s751_s5 }
  0x1c   : > { %p748_p10 = pnand %p746_p6, %p732_p11  ;;  %p754_p0 = scmp.lt.s32.totalorder %s752_s6, %s745_s3 }
  0x1e   : > { %p749_p12 = pneg %p748_p10  ;;  %p755_p1 = por %p754_p0, %p753_p9 }
  0x20   : > { %p756_p2 = pnand %p755_p1, %p749_p12 }
  0x22   : > { %759 = shalt.err (!%p756_p2)
}
  0x23   : > { %s797_s12 = smov 128   ;;  %s798_s13 = smov 8  }
  0x24   : > { %689 = dma.hbm_to_vmem [thread:$0]  (!%p862_p8), %s858_s21, 1024, %s860_s23, %s867_s25, %s797_s12, %s797_s12, %s798_s13  }
  0x25   : > { %p103_p11 = scmp.lt.s32.totalorder %s794_s9, 3  ;;  %p1121_p13 = scmp.ge.s32.totalorder %s794_s9, 1 }
  0x27   : > { %p104_p3 = pnand %p1121_p13, %p103_p11 }
  0x28   : > { %s109_s16 = sand.u32 (!%p104_p3), 1, %s786_s7  }
  0x29   : > { %107 = sbr.rel (%p104_p3) target bundleno = 394 (0x18a), region = 24  ;;  %s616_s17 = sshll.u32 (!%p104_p3), %s109_s16, 6 }
  0x2a   : > { %s110_s18 = scalar_lea.sflag (!%p104_p3), [#allocation4], %s109_s16  ;;  %s899_s19 = scalar_lea.vmem (!%p104_p3), [#allocation3], %s616_s17 }
  0x30   : > { %777 = dma.done.wait (%p849_p7), %s110_s18, 1024  }
  0x31   : > { %779 = vsyncadd (%p849_p7), %s110_s18, 4294966272  ;;  %vm140_vm0 = vcmask 146432   ;;  %v799_v0 = vmov 0.0   ;;  %vm143_vm1 = vcmask 140288   ;;  %v156_v1 = vld [vmem:[%s899_s19 + $0x10] sm:$0xff]  ;;  %v154_v2 = vld [vmem:[%s899_s19] sm:$0xff] }
  0x32   : > { %145 = vst.msk [vmem:[#allocation2 + $0x18] sm:$0xff] %vm140_vm0, %v799_v0  ;;  %146 = vst.msk [vmem:[#allocation2 + $0x20] sm:$0xff] %vm140_vm0, %v799_v0  ;;  %s800_s15 = smov 1   ;;  %v157_v3 = vld [vmem:[%s899_s19 + $0x18] sm:$0xff]  ;;  %v155_v4 = vld [vmem:[%s899_s19 + $0x8] sm:$0xff]  ;;  %s617_s20 = sshll.u32 %s608_s10, 4 }
  0x33   : > { %141 = vst.msk [vmem:[#allocation2] sm:$0xff] %vm140_vm0, %v799_v0  ;;  %142 = vst.msk [vmem:[#allocation2 + $0x8] sm:$0xff] %vm140_vm0, %v799_v0  ;;  %174 = vrot.lane.b32.xlu1 %v156_v1, %s800_s15  ;;  %170 = vrot.lane.b32.xlu0 %v154_v2, %s800_s15  ;;  %v159_v5 = vld [vmem:[%s899_s19 + $0x28] sm:$0xff]  ;;  %v158_v6 = vld [vmem:[%s899_s19 + $0x20] sm:$0xff]  ;;  %p134_p7 = scmp.lt.s32.totalorder %s617_s20, 31  ;;  %vm194_vm2 = vcmask 138248  }
  0x34   : > { %148 = vst.msk [vmem:[#allocation2 + $0x30] sm:$0xff] %vm140_vm0, %v799_v0  ;;  %149 = vst.msk [vmem:[#allocation2 + $0x38] sm:$0xff] %vm140_vm0, %v799_v0  ;;  %v161_v7 = vld [vmem:[%s899_s19 + $0x38] sm:$0xff]  ;;  %v160_v8 = vld [vmem:[%s899_s19 + $0x30] sm:$0xff]  ;;  %vm207_vm3 = vcmask 46080   ;;  %s801_s10 = smov 124  }
  0x35   : > { %151 = vst.msk [vmem:[#allocation2 + $0x48] sm:$0xff] %vm140_vm0, %v799_v0  ;;  %152 = vst.msk [vmem:[#allocation2 + $0x50] sm:$0xff] %vm140_vm0, %v799_v0  ;;  %s1127_s20 = smov (!%p134_p7, %s617_s20), 31  ;;  %s802_s24 = smov 120  }
  0x36   : > { %147 = vst.msk [vmem:[#allocation2 + $0x28] sm:$0x3] %vm143_vm1, %v799_v0  ;;  %144 = vst.msk [vmem:[#allocation2 + $0x10] sm:$0x3] %vm143_vm1, %v799_v0  ;;  %s683_s21 = sshll.u32 %s1127_s20, 5  ;;  %s803_s25 = smov 116  }
  0x37   : > { %150 = vst.msk [vmem:[#allocation2 + $0x40] sm:$0x3] %vm143_vm1, %v799_v0  ;;  %153 = vst.msk [vmem:[#allocation2 + $0x58] sm:$0x3] %vm143_vm1, %v799_v0  ;;  %176 = vrot.lane.b32.xlu1 %v157_v3, %s800_s15  ;;  %172 = vrot.lane.b32.xlu0 %v155_v4, %s800_s15  ;;  %s922_s9 = scalar_lea.vmem %s1118_s1, %s683_s21 }
  0x3b   : > { %180 = vrot.lane.b32.xlu1 %v159_v5, %s800_s15  ;;  %178 = vrot.lane.b32.xlu0 %v158_v6, %s800_s15 }
  0x3f   : > { %184 = vrot.lane.b32.xlu1 %v161_v7, %s800_s15  ;;  %182 = vrot.lane.b32.xlu0 %v160_v8, %s800_s15 }
  0xa5   : > { %v175_v9 = vpop.permute.xlu1 %174  ;;  %v171_v10 = vpop.permute.xlu0 %170 }
  0xa6   : > { %197 = vst.msk [vmem:[#allocation2 + $0x19] sm:$0xff] %vm194_vm2, %v175_v9  ;;  %195 = vst.msk [vmem:[#allocation2 + $0x1] sm:$0xff] %vm194_vm2, %v171_v10 }
  0xa9   : > { %v177_v11 = vpop.permute.xlu1 %176  ;;  %v173_v12 = vpop.permute.xlu0 %172 }
  0xaa   : > { %198 = vst.msk [vmem:[#allocation2 + $0x21] sm:$0xff] %vm194_vm2, %v177_v11  ;;  %196 = vst.msk [vmem:[#allocation2 + $0x9] sm:$0xff] %vm194_vm2, %v173_v12 }
  0xad   : > { %v204_v13 = vld [vmem:[#allocation2 + $0x18] sm:$0x3f]  ;;  %v203_v14 = vld [vmem:[#allocation2] sm:$0x3f]  ;;  %v181_v15 = vpop.permute.xlu1 %180  ;;  %v179_v16 = vpop.permute.xlu0 %178 }
  0xae   : > { %v212_v17 = vld [vmem:[#allocation2] sm:$0x3f]  ;;  %209 = vst.msk [vmem:[%s922_s9 + $0x8] sm:$0x3f] %vm207_vm3, %v204_v13  ;;  %208 = vst.msk [vmem:[%s922_s9] sm:$0x3f] %vm207_vm3, %v203_v14 }
  0xaf   : > { %200 = vst.msk [vmem:[#allocation2 + $0x39] sm:$0xff] %vm194_vm2, %v181_v15  ;;  %199 = vst.msk [vmem:[#allocation2 + $0x31] sm:$0xff] %vm194_vm2, %v179_v16  ;;  %220 = vrot.lane.b32.xlu0 %v212_v17, %s801_s10  ;;  %v213_v18 = vld [vmem:[#allocation2 + $0x18] sm:$0x3f]  ;;  %v237_v37 = vld [vmem:[#allocation2] sm:$0x3f] }
  0xb0   : > { %222 = vrot.lane.b32.xlu1 %v213_v18, %s801_s10  ;;  %v238_v38 = vld [vmem:[#allocation2 + $0x18] sm:$0x3f]  ;;  %v262_v41 = vld [vmem:[#allocation2] sm:$0x3f] }
  0xb1   : > { %v288_v19 = vld [vmem:[#allocation2 + $0x1c] sm:$0x3f]  ;;  %v456_v21 = vld [vmem:[#allocation2 + $0x24] sm:$0x3f]  ;;  %v185_v22 = vpop.permute.xlu1 %184  ;;  %v183_v23 = vpop.permute.xlu0 %182  ;;  %v455_v26 = vld [vmem:[#allocation2 + $0xc] sm:$0x3f] }
  0xb2   : > { %v372_v20 = vld [vmem:[#allocation2 + $0x20] sm:$0x3f]  ;;  %633 = vst.msk [vmem:[%s922_s9 + $0x88] sm:$0x3f] %vm207_vm3, %v288_v19  ;;  %665 = vst.msk [vmem:[%s922_s9 + $0x188] sm:$0x3f] %vm207_vm3, %v456_v21 }
  0xb3   : > { %649 = vst.msk [vmem:[%s922_s9 + $0x108] sm:$0x3f] %vm207_vm3, %v372_v20  ;;  %v287_v24 = vld [vmem:[#allocation2 + $0x4] sm:$0x3f]  ;;  %664 = vst.msk [vmem:[%s922_s9 + $0x180] sm:$0x3f] %vm207_vm3, %v455_v26 }
  0xb4   : > { %v371_v25 = vld [vmem:[#allocation2 + $0x8] sm:$0x3f]  ;;  %202 = vst.msk [vmem:[#allocation2 + $0x51] sm:$0xff] %vm194_vm2, %v185_v22  ;;  %201 = vst.msk [vmem:[#allocation2 + $0x49] sm:$0xff] %vm194_vm2, %v183_v23  ;;  %v263_v42 = vld [vmem:[#allocation2 + $0x18] sm:$0x3f] }
  0xb5   : > { %632 = vst.msk [vmem:[%s922_s9 + $0x80] sm:$0x3f] %vm207_vm3, %v287_v24  ;;  %648 = vst.msk [vmem:[%s922_s9 + $0x100] sm:$0x3f] %vm207_vm3, %v371_v25  ;;  %v296_v45 = vld [vmem:[#allocation2 + $0x4] sm:$0x3f] }
  0xb6   : > { %v457_v27 = vld [vmem:[#allocation2 + $0x3c] sm:$0x3f]  ;;  %v205_v28 = vld [vmem:[#allocation2 + $0x30] sm:$0x3f]  ;;  %v321_v49 = vld [vmem:[#allocation2 + $0x4] sm:$0x3f] }
  0xb7   : > { %v289_v29 = vld [vmem:[#allocation2 + $0x34] sm:$0x3f]  ;;  %666 = vst.msk [vmem:[%s922_s9 + $0x190] sm:$0x3f] %vm207_vm3, %v457_v27  ;;  %210 = vst.msk [vmem:[%s922_s9 + $0x10] sm:$0x3f] %vm207_vm3, %v205_v28 }
  0xb8   : > { %634 = vst.msk [vmem:[%s922_s9 + $0x90] sm:$0x3f] %vm207_vm3, %v289_v29  ;;  %v373_v30 = vld [vmem:[#allocation2 + $0x38] sm:$0x3f]  ;;  %v214_v31 = vld [vmem:[#allocation2 + $0x30] sm:$0x3f] }
  0xb9   : > { %650 = vst.msk [vmem:[%s922_s9 + $0x110] sm:$0x3f] %vm207_vm3, %v373_v30  ;;  %224 = vrot.lane.b32.xlu0 %v214_v31, %s801_s10  ;;  %v239_v39 = vld [vmem:[#allocation2 + $0x30] sm:$0x3f]  ;;  %v297_v46 = vld [vmem:[#allocation2 + $0x1c] sm:$0x3f] }
  0xba   : > { %v264_v43 = vld [vmem:[#allocation2 + $0x30] sm:$0x3f]  ;;  %v322_v50 = vld [vmem:[#allocation2 + $0x1c] sm:$0x3f]  ;;  %v346_v53 = vld [vmem:[#allocation2 + $0x4] sm:$0x3f] }
  0xbb   : > { %v458_v32 = vld [vmem:[#allocation2 + $0x54] sm:$0x3f]  ;;  %v206_v33 = vld [vmem:[#allocation2 + $0x48] sm:$0x3f]  ;;  %v347_v54 = vld [vmem:[#allocation2 + $0x1c] sm:$0x3f] }
  0xbc   : > { %v290_v34 = vld [vmem:[#allocation2 + $0x4c] sm:$0x3f]  ;;  %667 = vst.msk [vmem:[%s922_s9 + $0x198] sm:$0x3f] %vm207_vm3, %v458_v32  ;;  %211 = vst.msk [vmem:[%s922_s9 + $0x18] sm:$0x3f] %vm207_vm3, %v206_v33 }
  0xbd   : > { %635 = vst.msk [vmem:[%s922_s9 + $0x98] sm:$0x3f] %vm207_vm3, %v290_v34  ;;  %v374_v35 = vld [vmem:[#allocation2 + $0x50] sm:$0x3f]  ;;  %v215_v36 = vld [vmem:[#allocation2 + $0x48] sm:$0x3f]  ;;  %245 = vrot.lane.b32.xlu0 %v237_v37, %s802_s24 }
  0xbe   : > { %651 = vst.msk [vmem:[%s922_s9 + $0x118] sm:$0x3f] %vm207_vm3, %v374_v35  ;;  %226 = vrot.lane.b32.xlu1 %v215_v36, %s801_s10  ;;  %v240_v40 = vld [vmem:[#allocation2 + $0x48] sm:$0x3f]  ;;  %v298_v47 = vld [vmem:[#allocation2 + $0x34] sm:$0x3f] }
  0xbf   : > { %v265_v44 = vld [vmem:[#allocation2 + $0x48] sm:$0x3f]  ;;  %v323_v51 = vld [vmem:[#allocation2 + $0x34] sm:$0x3f]  ;;  %v381_v58 = vld [vmem:[#allocation2 + $0x20] sm:$0x3f] }
  0xc0   : > { %v299_v48 = vld [vmem:[#allocation2 + $0x4c] sm:$0x3f]  ;;  %v348_v55 = vld [vmem:[#allocation2 + $0x34] sm:$0x3f]  ;;  %v406_v62 = vld [vmem:[#allocation2 + $0x20] sm:$0x3f] }
  0xc1   : > { %249 = vrot.lane.b32.xlu0 %v239_v39, %s802_s24  ;;  %v324_v52 = vld [vmem:[#allocation2 + $0x4c] sm:$0x3f]  ;;  %v382_v59 = vld [vmem:[#allocation2 + $0x38] sm:$0x3f]  ;;  %v431_v2 = vld [vmem:[#allocation2 + $0x20] sm:$0x3f] }
  0xc2   : > { %247 = vrot.lane.b32.xlu1 %v238_v38, %s802_s24  ;;  %v349_v56 = vld [vmem:[#allocation2 + $0x4c] sm:$0x3f]  ;;  %v407_v63 = vld [vmem:[#allocation2 + $0x38] sm:$0x3f]  ;;  %v465_v6 = vld [vmem:[#allocation2 + $0x24] sm:$0x3f] }
  0xc3   : > { %v380_v57 = vld [vmem:[#allocation2 + $0x8] sm:$0x3f]  ;;  %v383_v60 = vld [vmem:[#allocation2 + $0x50] sm:$0x3f]  ;;  %v432_v3 = vld [vmem:[#allocation2 + $0x38] sm:$0x3f] }
  0xc4   : > { %v405_v61 = vld [vmem:[#allocation2 + $0x8] sm:$0x3f]  ;;  %v408_v0 = vld [vmem:[#allocation2 + $0x50] sm:$0x3f]  ;;  %v466_v7 = vld [vmem:[#allocation2 + $0x3c] sm:$0x3f] }
  0xc5   : > { %270 = vrot.lane.b32.xlu0 %v262_v41, %s803_s25  ;;  %v430_v1 = vld [vmem:[#allocation2 + $0x8] sm:$0x3f]  ;;  %v433_v4 = vld [vmem:[#allocation2 + $0x50] sm:$0x3f]  ;;  %v491_v11 = vld [vmem:[#allocation2 + $0x3c] sm:$0x3f] }
  0xc6   : > { %251 = vrot.lane.b32.xlu1 %v240_v40, %s802_s24  ;;  %v464_v5 = vld [vmem:[#allocation2 + $0xc] sm:$0x3f]  ;;  %v467_v8 = vld [vmem:[#allocation2 + $0x54] sm:$0x3f]  ;;  %v490_v10 = vld [vmem:[#allocation2 + $0x24] sm:$0x3f] }
  0xc7   : > { %v489_v9 = vld [vmem:[#allocation2 + $0xc] sm:$0x3f]  ;;  %v492_v12 = vld [vmem:[#allocation2 + $0x54] sm:$0x3f]  ;;  %v515_v14 = vld [vmem:[#allocation2 + $0x24] sm:$0x3f] }
  0xc8   : > { %v514_v13 = vld [vmem:[#allocation2 + $0xc] sm:$0x3f]  ;;  %v516_v15 = vld [vmem:[#allocation2 + $0x3c] sm:$0x3f]  ;;  %v517_v16 = vld [vmem:[#allocation2 + $0x54] sm:$0x3f] }
  0xc9   : > { %274 = vrot.lane.b32.xlu0 %v264_v43, %s803_s25 }
  0xca   : > { %272 = vrot.lane.b32.xlu1 %v263_v42, %s803_s25 }
  0xcd   : > { %304 = vrot.lane.b32.xlu0 %v296_v45, %s801_s10 }
  0xce   : > { %276 = vrot.lane.b32.xlu1 %v265_v44, %s803_s25 }
  0xd1   : > { %308 = vrot.lane.b32.xlu0 %v298_v47, %s801_s10 }
  0xd2   : > { %306 = vrot.lane.b32.xlu1 %v297_v46, %s801_s10 }
  0xd5   : > { %329 = vrot.lane.b32.xlu0 %v321_v49, %s802_s24 }
  0xd6   : > { %310 = vrot.lane.b32.xlu1 %v299_v48, %s801_s10 }
  0xd9   : > { %333 = vrot.lane.b32.xlu0 %v323_v51, %s802_s24 }
  0xda   : > { %331 = vrot.lane.b32.xlu1 %v322_v50, %s802_s24 }
  0xdd   : > { %354 = vrot.lane.b32.xlu0 %v346_v53, %s803_s25 }
  0xde   : > { %335 = vrot.lane.b32.xlu1 %v324_v52, %s802_s24 }
  0xe1   : > { %358 = vrot.lane.b32.xlu0 %v348_v55, %s803_s25 }
  0xe2   : > { %356 = vrot.lane.b32.xlu1 %v347_v54, %s803_s25 }
  0xe5   : > { %388 = vrot.lane.b32.xlu0 %v380_v57, %s801_s10 }
  0xe6   : > { %360 = vrot.lane.b32.xlu1 %v349_v56, %s803_s25 }
  0xe9   : > { %392 = vrot.lane.b32.xlu0 %v382_v59, %s801_s10 }
  0xea   : > { %390 = vrot.lane.b32.xlu1 %v381_v58, %s801_s10 }
  0xed   : > { %413 = vrot.lane.b32.xlu0 %v405_v61, %s802_s24 }
  0xee   : > { %394 = vrot.lane.b32.xlu1 %v383_v60, %s801_s10 }
  0xf1   : > { %417 = vrot.lane.b32.xlu0 %v407_v63, %s802_s24 }
  0xf2   : > { %415 = vrot.lane.b32.xlu1 %v406_v62, %s802_s24 }
  0xf5   : > { %438 = vrot.lane.b32.xlu0 %v430_v1, %s803_s25 }
  0xf6   : > { %419 = vrot.lane.b32.xlu1 %v408_v0, %s802_s24 }
  0xf9   : > { %442 = vrot.lane.b32.xlu0 %v432_v3, %s803_s25 }
  0xfa   : > { %440 = vrot.lane.b32.xlu1 %v431_v2, %s803_s25 }
  0xfd   : > { %472 = vrot.lane.b32.xlu0 %v464_v5, %s801_s10 }
  0xfe   : > { %444 = vrot.lane.b32.xlu1 %v433_v4, %s803_s25 }
 0x101   : > { %476 = vrot.lane.b32.xlu0 %v466_v7, %s801_s10 }
 0x102   : > { %474 = vrot.lane.b32.xlu1 %v465_v6, %s801_s10 }
 0x105   : > { %497 = vrot.lane.b32.xlu0 %v489_v9, %s802_s24 }
 0x106   : > { %478 = vrot.lane.b32.xlu1 %v467_v8, %s801_s10 }
 0x109   : > { %501 = vrot.lane.b32.xlu0 %v491_v11, %s802_s24 }
 0x10a   : > { %499 = vrot.lane.b32.xlu1 %v490_v10, %s802_s24 }
 0x10d   : > { %522 = vrot.lane.b32.xlu0 %v514_v13, %s803_s25 }
 0x10e   : > { %503 = vrot.lane.b32.xlu1 %v492_v12, %s802_s24 }
 0x111   : > { %526 = vrot.lane.b32.xlu0 %v516_v15, %s803_s25 }
 0x112   : > { %524 = vrot.lane.b32.xlu1 %v515_v14, %s803_s25 }
 0x116   : > { %528 = vrot.lane.b32.xlu1 %v517_v16, %s803_s25 }
 0x121   : > { %v221_v17 = vpop.permute.xlu0 %220 }
 0x122   : > { %620 = vst.msk [vmem:[%s922_s9 + $0x20] sm:$0x3f] %vm207_vm3, %v221_v17  ;;  %v223_v18 = vpop.permute.xlu1 %222 }
 0x123   : > { %621 = vst.msk [vmem:[%s922_s9 + $0x28] sm:$0x3f] %vm207_vm3, %v223_v18 }
 0x12b   : > { %v225_v19 = vpop.permute.xlu0 %224 }
 0x12c   : > { %622 = vst.msk [vmem:[%s922_s9 + $0x30] sm:$0x3f] %vm207_vm3, %v225_v19 }
 0x12f   : > { %v246_v21 = vpop.permute.xlu0 %245 }
 0x130   : > { %v227_v20 = vpop.permute.xlu1 %226  ;;  %624 = vst.msk [vmem:[%s922_s9 + $0x40] sm:$0x3f] %vm207_vm3, %v246_v21 }
 0x131   : > { %623 = vst.msk [vmem:[%s922_s9 + $0x38] sm:$0x3f] %vm207_vm3, %v227_v20 }
 0x133   : > { %v250_v23 = vpop.permute.xlu0 %249 }
 0x134   : > { %v248_v22 = vpop.permute.xlu1 %247  ;;  %626 = vst.msk [vmem:[%s922_s9 + $0x50] sm:$0x3f] %vm207_vm3, %v250_v23 }
 0x135   : > { %625 = vst.msk [vmem:[%s922_s9 + $0x48] sm:$0x3f] %vm207_vm3, %v248_v22 }
 0x137   : > { %v271_v25 = vpop.permute.xlu0 %270 }
 0x138   : > { %v252_v24 = vpop.permute.xlu1 %251  ;;  %628 = vst.msk [vmem:[%s922_s9 + $0x60] sm:$0x3f] %vm207_vm3, %v271_v25 }
 0x139   : > { %627 = vst.msk [vmem:[%s922_s9 + $0x58] sm:$0x3f] %vm207_vm3, %v252_v24 }
 0x13b   : > { %v275_v27 = vpop.permute.xlu0 %274 }
 0x13c   : > { %v273_v26 = vpop.permute.xlu1 %272  ;;  %630 = vst.msk [vmem:[%s922_s9 + $0x70] sm:$0x3f] %vm207_vm3, %v275_v27 }
 0x13d   : > { %629 = vst.msk [vmem:[%s922_s9 + $0x68] sm:$0x3f] %vm207_vm3, %v273_v26 }
 0x13f   : > { %v305_v29 = vpop.permute.xlu0 %304 }
 0x140   : > { %v277_v28 = vpop.permute.xlu1 %276  ;;  %636 = vst.msk [vmem:[%s922_s9 + $0xa0] sm:$0x3f] %vm207_vm3, %v305_v29 }
 0x141   : > { %631 = vst.msk [vmem:[%s922_s9 + $0x78] sm:$0x3f] %vm207_vm3, %v277_v28 }
 0x143   : > { %v309_v31 = vpop.permute.xlu0 %308 }
 0x144   : > { %v307_v30 = vpop.permute.xlu1 %306  ;;  %638 = vst.msk [vmem:[%s922_s9 + $0xb0] sm:$0x3f] %vm207_vm3, %v309_v31 }
 0x145   : > { %637 = vst.msk [vmem:[%s922_s9 + $0xa8] sm:$0x3f] %vm207_vm3, %v307_v30 }
 0x147   : > { %v330_v33 = vpop.permute.xlu0 %329 }
 0x148   : > { %v311_v32 = vpop.permute.xlu1 %310  ;;  %640 = vst.msk [vmem:[%s922_s9 + $0xc0] sm:$0x3f] %vm207_vm3, %v330_v33 }
 0x149   : > { %639 = vst.msk [vmem:[%s922_s9 + $0xb8] sm:$0x3f] %vm207_vm3, %v311_v32 }
 0x14b   : > { %v334_v35 = vpop.permute.xlu0 %333 }
 0x14c   : > { %v332_v34 = vpop.permute.xlu1 %331  ;;  %642 = vst.msk [vmem:[%s922_s9 + $0xd0] sm:$0x3f] %vm207_vm3, %v334_v35 }
 0x14d   : > { %641 = vst.msk [vmem:[%s922_s9 + $0xc8] sm:$0x3f] %vm207_vm3, %v332_v34 }
 0x14f   : > { %v355_v37 = vpop.permute.xlu0 %354 }
 0x150   : > { %v336_v36 = vpop.permute.xlu1 %335  ;;  %644 = vst.msk [vmem:[%s922_s9 + $0xe0] sm:$0x3f] %vm207_vm3, %v355_v37 }
 0x151   : > { %643 = vst.msk [vmem:[%s922_s9 + $0xd8] sm:$0x3f] %vm207_vm3, %v336_v36 }
 0x153   : > { %v359_v39 = vpop.permute.xlu0 %358 }
 0x154   : > { %v357_v38 = vpop.permute.xlu1 %356  ;;  %646 = vst.msk [vmem:[%s922_s9 + $0xf0] sm:$0x3f] %vm207_vm3, %v359_v39 }
 0x155   : > { %645 = vst.msk [vmem:[%s922_s9 + $0xe8] sm:$0x3f] %vm207_vm3, %v357_v38 }
 0x157   : > { %v389_v41 = vpop.permute.xlu0 %388 }
 0x158   : > { %v361_v40 = vpop.permute.xlu1 %360  ;;  %652 = vst.msk [vmem:[%s922_s9 + $0x120] sm:$0x3f] %vm207_vm3, %v389_v41 }
 0x159   : > { %647 = vst.msk [vmem:[%s922_s9 + $0xf8] sm:$0x3f] %vm207_vm3, %v361_v40 }
 0x15b   : > { %v393_v43 = vpop.permute.xlu0 %392 }
 0x15c   : > { %v391_v42 = vpop.permute.xlu1 %390  ;;  %654 = vst.msk [vmem:[%s922_s9 + $0x130] sm:$0x3f] %vm207_vm3, %v393_v43 }
 0x15d   : > { %653 = vst.msk [vmem:[%s922_s9 + $0x128] sm:$0x3f] %vm207_vm3, %v391_v42 }
 0x15f   : > { %v414_v45 = vpop.permute.xlu0 %413 }
 0x160   : > { %v395_v44 = vpop.permute.xlu1 %394  ;;  %656 = vst.msk [vmem:[%s922_s9 + $0x140] sm:$0x3f] %vm207_vm3, %v414_v45 }
 0x161   : > { %655 = vst.msk [vmem:[%s922_s9 + $0x138] sm:$0x3f] %vm207_vm3, %v395_v44 }
 0x163   : > { %v418_v47 = vpop.permute.xlu0 %417 }
 0x164   : > { %v416_v46 = vpop.permute.xlu1 %415  ;;  %658 = vst.msk [vmem:[%s922_s9 + $0x150] sm:$0x3f] %vm207_vm3, %v418_v47 }
 0x165   : > { %657 = vst.msk [vmem:[%s922_s9 + $0x148] sm:$0x3f] %vm207_vm3, %v416_v46 }
 0x167   : > { %v439_v49 = vpop.permute.xlu0 %438 }
 0x168   : > { %v420_v48 = vpop.permute.xlu1 %419  ;;  %660 = vst.msk [vmem:[%s922_s9 + $0x160] sm:$0x3f] %vm207_vm3, %v439_v49 }
 0x169   : > { %659 = vst.msk [vmem:[%s922_s9 + $0x158] sm:$0x3f] %vm207_vm3, %v420_v48 }
 0x16b   : > { %v443_v51 = vpop.permute.xlu0 %442 }
 0x16c   : > { %v441_v50 = vpop.permute.xlu1 %440  ;;  %662 = vst.msk [vmem:[%s922_s9 + $0x170] sm:$0x3f] %vm207_vm3, %v443_v51 }
 0x16d   : > { %661 = vst.msk [vmem:[%s922_s9 + $0x168] sm:$0x3f] %vm207_vm3, %v441_v50 }
 0x16f   : > { %v473_v53 = vpop.permute.xlu0 %472 }
 0x170   : > { %v445_v52 = vpop.permute.xlu1 %444  ;;  %668 = vst.msk [vmem:[%s922_s9 + $0x1a0] sm:$0x3f] %vm207_vm3, %v473_v53 }
 0x171   : > { %663 = vst.msk [vmem:[%s922_s9 + $0x178] sm:$0x3f] %vm207_vm3, %v445_v52 }
 0x173   : > { %v477_v55 = vpop.permute.xlu0 %476 }
 0x174   : > { %v475_v54 = vpop.permute.xlu1 %474  ;;  %670 = vst.msk [vmem:[%s922_s9 + $0x1b0] sm:$0x3f] %vm207_vm3, %v477_v55 }
 0x175   : > { %669 = vst.msk [vmem:[%s922_s9 + $0x1a8] sm:$0x3f] %vm207_vm3, %v475_v54 }
 0x177   : > { %v498_v57 = vpop.permute.xlu0 %497 }
 0x178   : > { %v479_v56 = vpop.permute.xlu1 %478  ;;  %672 = vst.msk [vmem:[%s922_s9 + $0x1c0] sm:$0x3f] %vm207_vm3, %v498_v57 }
 0x179   : > { %671 = vst.msk [vmem:[%s922_s9 + $0x1b8] sm:$0x3f] %vm207_vm3, %v479_v56 }
 0x17b   : > { %v502_v59 = vpop.permute.xlu0 %501 }
 0x17c   : > { %v500_v58 = vpop.permute.xlu1 %499  ;;  %674 = vst.msk [vmem:[%s922_s9 + $0x1d0] sm:$0x3f] %vm207_vm3, %v502_v59 }
 0x17d   : > { %673 = vst.msk [vmem:[%s922_s9 + $0x1c8] sm:$0x3f] %vm207_vm3, %v500_v58 }
 0x17f   : > { %v523_v61 = vpop.permute.xlu0 %522 }
 0x180   : > { %v504_v60 = vpop.permute.xlu1 %503  ;;  %676 = vst.msk [vmem:[%s922_s9 + $0x1e0] sm:$0x3f] %vm207_vm3, %v523_v61 }
 0x181   : > { %675 = vst.msk [vmem:[%s922_s9 + $0x1d8] sm:$0x3f] %vm207_vm3, %v504_v60 }
 0x183   : > { %v527_v63 = vpop.permute.xlu0 %526 }
 0x184   : > { %v525_v62 = vpop.permute.xlu1 %524  ;;  %678 = vst.msk [vmem:[%s922_s9 + $0x1f0] sm:$0x3f] %vm207_vm3, %v527_v63 }
 0x185   : > { %677 = vst.msk [vmem:[%s922_s9 + $0x1e8] sm:$0x3f] %vm207_vm3, %v525_v62 }
 0x188   : > { %v529_v0 = vpop.permute.xlu1 %528 }
 0x189   : > { %679 = vst.msk [vmem:[%s922_s9 + $0x1f8] sm:$0x3f] %vm207_vm3, %v529_v0 }
 0x18a PF: > { %p11_p8 = scmp.ge.s32.totalorder %s834_s11, 4   ;;  %s1122_s6 = smov %s786_s7 }
 0x18b   : > { %s1123_s7 = smov %s790_s8  ;;  %s1124_s8 = smov %s844_s14 }
 0x18c   : > { %s1125_s9 = smov %s834_s11  ;;  %13 = sbr.rel (!%p11_p8) target bundleno = 3 (0x3), region = 79 }
 0x193   :  { %563 = vsyncpa [#allocation4], 1 }
 0x194   :  { %565 = vsyncpa [#allocation4 + $0x1], 1 }

</bundles_post_ra>
